<compile_context>
chip_gen: v6e
topology: v6e:2x2x1
jax: 0.10.0
libtpu: 0.0.40
codegen_flags: <defaults>
</compile_context>

<pallas_src>
import functools

import jax
import jax.numpy as jnp
from jax.experimental import pallas as pl
from jax.experimental.pallas import tpu as pltpu


def _mhln_kernel(x_ref, segr_ref, segrf_ref, segtm_ref, segtw_ref, o_ref,
                 *, eps: float, mean_precision):
    # x_ref:    (tile_n, HD) block in the input dtype (bf16/f32)
    # segr_ref: (HD, H)  one-hot / D, input dtype  -> per-head mean
    # segrf_ref:(HD, H)  one-hot / D, f32          -> per-head E[x^2]
    # segtm_ref:(H, HD)  one-hot, f32              -> broadcast mean to HD lanes
    # segtw_ref:(H, HD)  weight folded in, f32     -> broadcast rstd * w
    x = x_ref[...]                                   # (tn, HD), input dtype
    xf = x.astype(jnp.float32)

    # Per-head mean: segmented reduction on the MXU, f32 accumulation.
    # bf16 operands go to the MXU directly (no f32 LHS copy is materialized).
    mean = jnp.dot(x, segr_ref[...],
                   preferred_element_type=jnp.float32,
                   precision=mean_precision)                          # (tn, H)

    # Per-head E[x^2]; squares kept in f32, HIGHEST so the MXU does not
    # truncate the f32 LHS to a single bf16 pass before summation.
    ex2 = jnp.dot(xf * xf, segrf_ref[...],
                  preferred_element_type=jnp.float32,
                  precision=jax.lax.Precision.HIGHEST)                # (tn, H)

    var = ex2 - mean * mean
    rstd = jax.lax.rsqrt(var + eps)                                   # EUP

    # Broadcast back to H*D lanes on the MXU (HIGHEST: keep f32 stats exact).
    mean_full = jnp.dot(mean, segtm_ref[...],
                        preferred_element_type=jnp.float32,
                        precision=jax.lax.Precision.HIGHEST)          # (tn, HD)
    scale_full = jnp.dot(rstd, segtw_ref[...],
                         preferred_element_type=jnp.float32,
                         precision=jax.lax.Precision.HIGHEST)         # (tn, HD)

    o_ref[...] = ((xf - mean_full) * scale_full).astype(o_ref.dtype)


def _default_vmem_limit_bytes() -> int:
    # <= 50% of the chip's VMEM capacity; fall back to the conservative 32 MiB
    # default scoped limit if the query is unavailable.
    try:
        return int(pltpu.get_tpu_info().vmem_capacity_bytes) // 2
    except Exception:
        return 32 * 1024 * 1024


def multi_head_layer_norm(hidden_states: jax.Array,
                          weight: jax.Array,
                          eps: float = 1e-5,
                          target_block_bytes: int = 512 * 1024) -> jax.Array:
    """hidden_states: (B, S, H, D); weight: (H, D). Returns same shape/dtype."""
    B, S, H, D = hidden_states.shape
    assert weight.shape == (H, D)
    N = B * S
    HD = H * D
    in_dtype = hidden_states.dtype

    # Lane-dense 2-D view (pure metadata reshape, no HBM traffic).
    x2 = hidden_states.reshape(N, HD)

    # Segment matrices for per-head reduce / broadcast on the MXU.
    head_ids = jnp.repeat(jnp.arange(H, dtype=jnp.int32), D)          # (HD,)
    onehot = jax.nn.one_hot(head_ids, H, dtype=jnp.float32)           # (HD, H)
    inv_d = 1.0 / float(D)
    segr_f32 = onehot * inv_d                                         # (HD, H)
    segr_in = segr_f32.astype(in_dtype)                               # MXU-native operand
    segt_mean = onehot.T                                              # (H, HD)
    segt_w = onehot.T * weight.reshape(1, HD).astype(jnp.float32)     # (H, HD), weight folded

    # For f32 inputs run the mean reduce at HIGHEST too (otherwise the MXU
    # would truncate x to bf16); for bf16 inputs the default single pass is
    # already exact (one-hot/D RHS, f32 accumulation).
    mean_precision = (jax.lax.Precision.HIGHEST
                      if in_dtype == jnp.float32 else None)

    # Tile along the fused N axis: ~target_block_bytes of input per block
    # (multiple of 8 rows).  Clamp to the array, then drive the grid toward
    # >= 4 steps (>= 2 per v7x TensorCore) so the DMA pipeline overlaps.
    itemsize = jnp.dtype(in_dtype).itemsize
    tile_n = max(8, (target_block_bytes // (HD * itemsize)) // 8 * 8)
    n_pad8 = ((N + 7) // 8) * 8
    tile_n = min(tile_n, n_pad8)
    while pl.cdiv(max(N, 1), tile_n) < 4 and tile_n > 8:
        tile_n = max(8, ((tile_n // 2) + 7) // 8 * 8)

    grid = (pl.cdiv(max(N, 1), tile_n),)

    kernel = functools.partial(_mhln_kernel, eps=float(eps),
                               mean_precision=mean_precision)

    out = pl.pallas_call(
        kernel,
        out_shape=jax.ShapeDtypeStruct((N, HD), in_dtype),
        grid_spec=pltpu.PrefetchScalarGridSpec(
            num_scalar_prefetch=0,
            grid=grid,
            in_specs=[
                pl.BlockSpec((tile_n, HD), lambda i: (i, 0)),
                pl.BlockSpec((HD, H), lambda i: (0, 0)),
                pl.BlockSpec((HD, H), lambda i: (0, 0)),
                pl.BlockSpec((H, HD), lambda i: (0, 0)),
                pl.BlockSpec((H, HD), lambda i: (0, 0)),
            ],
            out_specs=pl.BlockSpec((tile_n, HD), lambda i: (i, 0)),
        ),
        compiler_params=pltpu.CompilerParams(
            dimension_semantics=("parallel",),
            vmem_limit_bytes=_default_vmem_limit_bytes(),
        ),
    )(x2, segr_in, segr_f32, segt_mean, segt_w)

    return out.reshape(B, S, H, D)


def _reference(hidden_states, weight, eps=1e-5):
    """Pure-JAX port of the PyTorch reference for correctness checking."""
    input_dtype = hidden_states.dtype
    x = hidden_states.astype(jnp.float32)
    mean = jnp.mean(x, axis=-1, keepdims=True)
    var = jnp.mean((x - mean) ** 2, axis=-1, keepdims=True)
    x = (x - mean) * jax.lax.rsqrt(var + eps)
    x = weight.astype(jnp.float32) * x
    return x.astype(input_dtype)


if __name__ == "__main__":
    key = jax.random.PRNGKey(0)
    B, S, H, D = 2, 8, 4, 32  # batch, seq, heads, head_dim

    kx, kw, kx2 = jax.random.split(key, 3)
    x = jax.random.normal(kx, (B, S, H, D), dtype=jnp.float32).astype(jnp.bfloat16)
    # Module initializes weight = ones(hidden_size); perturb slightly so the
    # scaling path is actually exercised.
    weight = (jnp.ones((H, D), dtype=jnp.float32)
              + 0.01 * jax.random.normal(kw, (H, D), dtype=jnp.float32))

    out = jax.block_until_ready(multi_head_layer_norm(x, weight, eps=1e-5))
    ref = _reference(x, weight, eps=1e-5)
    assert out.shape == x.shape and out.dtype == x.dtype
    err = float(jnp.max(jnp.abs(out.astype(jnp.float32) - ref.astype(jnp.float32))))
    assert err < 2e-2, f"max abs err too large: {err}"

    # Exercise the edge-block path: N = B*S not a multiple of tile_n (no
    # host-side pad/slice anymore; Pallas masks the partial block write).
    B2, S2 = 1, 13
    x_odd = jax.random.normal(kx2, (B2, S2, H, D), dtype=jnp.float32).astype(jnp.bfloat16)
    out_odd = jax.block_until_ready(multi_head_layer_norm(x_odd, weight, eps=1e-5))
    ref_odd = _reference(x_odd, weight, eps=1e-5)
    assert out_odd.shape == x_odd.shape and out_odd.dtype == x_odd.dtype
    err_odd = float(jnp.max(jnp.abs(out_odd.astype(jnp.float32)
                                    - ref_odd.astype(jnp.float32))))
    assert err_odd < 2e-2, f"edge-block max abs err too large: {err_odd}"

    print("KERNEL_OK")
</pallas_src>

<mosaic_0001>
module attributes {stable_mosaic.version = 11 : i64} {
  func.func @_mhln_kernel(%arg0: i32, %arg1: memref<8x128xbf16, #tpu.memory_space<vmem>>, %arg2: memref<128x4xbf16, #tpu.memory_space<vmem>>, %arg3: memref<128x4xf32, #tpu.memory_space<vmem>>, %arg4: memref<4x128xf32, #tpu.memory_space<vmem>>, %arg5: memref<4x128xf32, #tpu.memory_space<vmem>>, %arg6: memref<8x128xbf16, #tpu.memory_space<vmem>>) attributes {dimension_semantics = [#tpu.dimension_semantics<parallel>], iteration_bounds = array<i64: 2>, scalar_prefetch = 0 : i64, scratch_operands = 0 : i64, tpu.core_type = #tpu.core_type<tc>, window_params = [{transform_indices = @transform_0, window_bounds = array<i64: 8, 128>}, {pipeline_mode = #tpu.pipeline_mode<synchronous>, transform_indices = @transform_1, window_bounds = array<i64: 128, 4>}, {pipeline_mode = #tpu.pipeline_mode<synchronous>, transform_indices = @transform_2, window_bounds = array<i64: 128, 4>}, {pipeline_mode = #tpu.pipeline_mode<synchronous>, transform_indices = @transform_3, window_bounds = array<i64: 4, 128>}, {pipeline_mode = #tpu.pipeline_mode<synchronous>, transform_indices = @transform_4, window_bounds = array<i64: 4, 128>}, {transform_indices = @transform_5, window_bounds = array<i64: 8, 128>}]} {
    %c0 = arith.constant 0 : index
    %c0_0 = arith.constant 0 : index
    %0 = vector.load %arg1[%c0, %c0_0] : memref<8x128xbf16, #tpu.memory_space<vmem>>, vector<8x128xbf16>
    %1 = arith.extf %0 : vector<8x128xbf16> to vector<8x128xf32>
    %c0_1 = arith.constant 0 : index
    %c0_2 = arith.constant 0 : index
    %2 = vector.load %arg2[%c0_1, %c0_2] : memref<128x4xbf16, #tpu.memory_space<vmem>>, vector<128x4xbf16>
    %cst = arith.constant dense<0.000000e+00> : vector<8x4xf32>
    %3 = tpu.matmul %0, %2, %cst {dimension_numbers = #tpu.dot_dimension_numbers<[1], [0], [0], [1], [0, 0, 1, 1], [], []>} : vector<8x128xbf16>, vector<128x4xbf16>, vector<8x4xf32> -> vector<8x4xf32>
    %4 = arith.mulf %1, %1 : vector<8x128xf32>
    %c0_3 = arith.constant 0 : index
    %c0_4 = arith.constant 0 : index
    %5 = vector.load %arg3[%c0_3, %c0_4] : memref<128x4xf32, #tpu.memory_space<vmem>>, vector<128x4xf32>
    %cst_5 = arith.constant dense<0.000000e+00> : vector<8x4xf32>
    %6 = tpu.matmul %4, %5, %cst_5 {dimension_numbers = #tpu.dot_dimension_numbers<[1], [0], [0], [1], [0, 0, 1, 1], [], []>, precision = #tpu.contract_precision<fp32>} : vector<8x128xf32>, vector<128x4xf32>, vector<8x4xf32> -> vector<8x4xf32>
    %7 = arith.mulf %3, %3 : vector<8x4xf32>
    %8 = arith.subf %6, %7 : vector<8x4xf32>
    %cst_6 = arith.constant 9.99999974E-6 : f32
    %9 = vector.broadcast %cst_6 : f32 to vector<8x4xf32>
    %10 = arith.addf %8, %9 : vector<8x4xf32>
    %11 = math.rsqrt %10 : vector<8x4xf32>
    %c0_7 = arith.constant 0 : index
    %c0_8 = arith.constant 0 : index
    %12 = vector.load %arg4[%c0_7, %c0_8] : memref<4x128xf32, #tpu.memory_space<vmem>>, vector<4x128xf32>
    %cst_9 = arith.constant dense<0.000000e+00> : vector<8x128xf32>
    %13 = tpu.matmul %3, %12, %cst_9 {dimension_numbers = #tpu.dot_dimension_numbers<[1], [0], [0], [1], [0, 0, 1, 1], [], []>, precision = #tpu.contract_precision<fp32>} : vector<8x4xf32>, vector<4x128xf32>, vector<8x128xf32> -> vector<8x128xf32>
    %c0_10 = arith.constant 0 : index
    %c0_11 = arith.constant 0 : index
    %14 = vector.load %arg5[%c0_10, %c0_11] : memref<4x128xf32, #tpu.memory_space<vmem>>, vector<4x128xf32>
    %cst_12 = arith.constant dense<0.000000e+00> : vector<8x128xf32>
    %15 = tpu.matmul %11, %14, %cst_12 {dimension_numbers = #tpu.dot_dimension_numbers<[1], [0], [0], [1], [0, 0, 1, 1], [], []>, precision = #tpu.contract_precision<fp32>} : vector<8x4xf32>, vector<4x128xf32>, vector<8x128xf32> -> vector<8x128xf32>
    %16 = arith.subf %1, %13 : vector<8x128xf32>
    %17 = arith.mulf %16, %15 : vector<8x128xf32>
    %18 = arith.truncf %17 : vector<8x128xf32> to vector<8x128xbf16>
    %c0_13 = arith.constant 0 : index
    %c0_14 = arith.constant 0 : index
    %19 = vector.load %arg6[%c0_13, %c0_14] : memref<8x128xbf16, #tpu.memory_space<vmem>>, vector<8x128xbf16>
    tpu.vector_store %arg6[%c0_13, %c0_14], %18 {strides = array<i32>} : memref<8x128xbf16, #tpu.memory_space<vmem>>, vector<8x128xbf16>,
    return
  }
  func.func @transform_0(%arg0: i32) -> (i32, i32) {
    %c0_i32 = arith.constant 0 : i32
    %c0_i32_0 = arith.constant 0 : i32
    return %arg0, %c0_i32 : i32, i32
  }
  func.func @transform_1(%arg0: i32) -> (i32, i32) {
    %c0_i32 = arith.constant 0 : i32
    %c0_i32_0 = arith.constant 0 : i32
    %c0_i32_1 = arith.constant 0 : i32
    return %c0_i32, %c0_i32_0 : i32, i32
  }
  func.func @transform_2(%arg0: i32) -> (i32, i32) {
    %c0_i32 = arith.constant 0 : i32
    %c0_i32_0 = arith.constant 0 : i32
    %c0_i32_1 = arith.constant 0 : i32
    return %c0_i32, %c0_i32_0 : i32, i32
  }
  func.func @transform_3(%arg0: i32) -> (i32, i32) {
    %c0_i32 = arith.constant 0 : i32
    %c0_i32_0 = arith.constant 0 : i32
    %c0_i32_1 = arith.constant 0 : i32
    return %c0_i32, %c0_i32_0 : i32, i32
  }
  func.func @transform_4(%arg0: i32) -> (i32, i32) {
    %c0_i32 = arith.constant 0 : i32
    %c0_i32_0 = arith.constant 0 : i32
    %c0_i32_1 = arith.constant 0 : i32
    return %c0_i32, %c0_i32_0 : i32, i32
  }
  func.func @transform_5(%arg0: i32) -> (i32, i32) {
    %c0_i32 = arith.constant 0 : i32
    %c0_i32_0 = arith.constant 0 : i32
    return %arg0, %c0_i32 : i32, i32
  }
}

</mosaic_0001>

<bundles_post_ra>
// kernel: tpu_custom_call.1
= control target key start
LH: loop header
LB: loop body
LE: loop exit
PB: predicated region body
PF: predicated region fallthrough
CT: control target
= control target key end

     0   :  { %10 = vsyncpa [#allocation3], 0  ;;  %s3223_s0 = inlined_call_operand.vmem [shape: bf16[16,128], index: 0, kind: input, shape index: {}]   ;;  %s3224_s1 = inlined_call_operand.vmem [shape: bf16[128,4], index: 1, kind: input, shape index: {}]   ;;  %s3225_s2 = inlined_call_operand.vmem [shape: f32[128,4], index: 2, kind: input, shape index: {}]   ;;  %s3226_s3 = inlined_call_operand.vmem [shape: f32[4,128], index: 3, kind: input, shape index: {}]   ;;  %s3227_s4 = inlined_call_operand.vmem [shape: f32[4,128], index: 4, kind: input, shape index: {}]   ;;  %s3228_s5 = inlined_call_operand.hbm [shape: bf16[16,128], index: 5, kind: output, shape index: {}]  }
   0x1   :  { %12 = vsyncpa [#allocation3 + $0x1], 0  ;;  %s2563_s18 = smov 0   ;;  %s2565_s19 = smov 0  }
   0x2   :  { %s2567_s20 = smov 0   ;;  %s2569_s21 = smov 0  }
   0x3 LB: > { %s2584_s22 = sadd.s32 4294967295, %s2528_s21   ;;  %s1974_s23 = sadd.s32 4294967294, %s2528_s21   ;;  %s2528_s21 = sphi %s2569_s21, %s3234_s21   ;;  %s2524_s20 = sphi %s2567_s20, %s3233_s20   ;;  %s2520_s19 = sphi %s2565_s19, %s3232_s19   ;;  %s2516_s18 = sphi %s2563_s18, %s3231_s18  }
   0x4   : > { %s2588_s24 = sadd.s32 1, %s2528_s21   ;;  %s135_s25 = sadd.s32 1, %s2524_s20 }
   0x5   : > { %s132_s26 = ssub.s32 %s2528_s21, %s2588_s24  ;;  %p145_p0 = scmp.ne.s32.totalorder %s2524_s20, %s2520_s19 }
   0x6   : > { %p133_p1 = scmp.eq.s32.totalorder %s132_s26, 0  ;;  %p146_p2 = scmp.eq.s32.totalorder %s2584_s22, 1 }
   0x7   : > { %p151_p3 = scmp.ne.s32.totalorder %s2520_s19, %s2516_s18  ;;  %p152_p4 = scmp.eq.s32.totalorder %s1974_s23, 1 }
   0x8   : > { %s2599_s27 = scalar_select %p133_p1, %s2524_s20, %s135_s25  }
   0x9   : > { %p2601_p5 = por %p146_p2, %p145_p0  ;;  %p2605_p6 = por %p152_p4, %p151_p3 }
   0xa   : > { %p1977_p7 = scmp.ge.s32.totalorder %s2528_s21, 1  ;;  %p189_p8 = scmp.lt.s32.totalorder %s2528_s21, 3 }
   0xc   : > { %p190_p9 = pnand %p1977_p7, %p189_p8 }
   0xd   : > { %p216_p10 = scmp.lt.s32.totalorder (!%p190_p9), %s2584_s22, 1  ;;  %s213_s14 = sand.u32 (!%p190_p9), 1, %s2520_s19  }
   0xe   : > { %193 = sbr.rel (%p190_p9) target bundleno = 600 (0x258), region = 40  ;;  %s1978_s15 = sshll.u32 (!%p190_p9), %s213_s14, 2 }
   0xf   : > { %s1989_s16 = sshll.u32 (!%p190_p9), %s2584_s22, 6  ;;  %s1902_s6 = scalar_lea.sflag (!%p190_p9), [#allocation3], %s213_s14 }
  0x10   : > { %s1913_s30 = scalar_lea.hbm (!%p190_p9), %s3228_s5, %s1989_s16  ;;  %s2532_s8 = smov (!%p190_p9), [#allocation2]  }
  0x11   : > { %s2472_s9 = sshll.u32 (!%p190_p9), %s2532_s8, 4  ;;  %s2473_s9 = int_to_ptr.vmem [resolvable:$false] %s2472_s9 }
  0x13   : > { %v2458_v0 = vld [vmem:[%s3224_s1 + $0x38] sm:$0xff]   ;;  %v2530_v1 = vmov 0.0   ;;  %v2459_v4 = vld [vmem:[%s3224_s1 + $0x30] sm:$0xff]   ;;  %v2630_v6 = vld [vmem:[%s3225_s2 + $0x68] sm:$0xff]  ;;  %vm2531_vm0 = vmmov 0   ;;  %s217_s25 = scalar_select %p216_p10, %s2584_s22, 1 }
  0x14   : > { %2127 = vmatprep.subr.bf16.mxu0 %v2530_v1  ;;  %2147 = vmatprep.subr.mxu1 %v2530_v1  ;;  %v343_v2 = vld [vmem:[%s3225_s2 + $0x78] sm:$0xff]  ;;  %v342_v5 = vld [vmem:[%s3225_s2 + $0x70] sm:$0xff]  ;;  %v2642_v8 = vand.u32 4294901760, %v2630_v6  ;;  %v2647_v9 = vld [vmem:[%s3225_s2 + $0x60] sm:$0xff]  ;;  %vm994_vm1 = vcmask 1043456   ;;  %vm990_vm2 = vcmask 31744  }
  0x15   : > { %2128 = vmatpush3.bf16.msra.mxu0 %v2458_v0  ;;  %v2619_v3 = vand.u32 4294901760, %v343_v2  ;;  %2143 = vmatprep.mubr.msk.bf16.mxu0 %vm2531_vm0, %v2530_v1  ;;  %v2636_v7 = vand.u32 4294901760, %v342_v5  ;;  %v2653_v10 = vld [vmem:[%s3225_s2 + $0x58] sm:$0xff]  ;;  %v2460_v11 = vld [vmem:[%s3224_s1 + $0x28] sm:$0xff]   ;;  %v2661_v12 = vand.u32 4294901760, %v2647_v9  ;;  %v2668_v13 = vld [vmem:[%s3225_s2 + $0x50] sm:$0xff] }
  0x16   : > { %2129 = vmatprep.subr.bf16.mxu0 %v2530_v1  ;;  %2179 = vmatprep.mubr.msk.f32.mxu1 %vm2531_vm0, %v2530_v1  ;;  %v2672_v14 = vand.u32 4294901760, %v2653_v10  ;;  %v2678_v15 = vld [vmem:[%s3225_s2 + $0x48] sm:$0xff]  ;;  %s1979_s10 = sshll.u32 %s217_s25, 2  ;;  %v2461_v16 = vld [vmem:[%s3224_s1 + $0x20] sm:$0xff]   ;;  %v2685_v17 = vand.u32 4294901760, %v2668_v13  ;;  %v2705_v20 = vld [vmem:[%s3225_s2 + $0x38] sm:$0xff]  ;;  %v2772_v37 = vsub.f32 %v2630_v6, %v2642_v8 }
  0x17   : > { %2148 = vmatpush3.msra.mxu1 %v2619_v3  ;;  %v2692_v18 = vld [vmem:[%s3225_s2 + $0x40] sm:$0xff]  ;;  %v2696_v19 = vand.u32 4294901760, %v2678_v15  ;;  %s219_s17 = scalar_lea.vmem %s3223_s0, %s1979_s10  ;;  %v2462_v21 = vld [vmem:[%s3224_s1 + $0x18] sm:$0xff]   ;;  %v2719_v23 = vld [vmem:[%s3225_s2 + $0x30] sm:$0xff]  ;;  %v2725_v25 = vand.u32 4294901760, %v2705_v20  ;;  %v2737_v28 = vsub.f32 %v343_v2, %v2619_v3  ;;  %v2756_v33 = vsub.f32 %v342_v5, %v2636_v7  ;;  %s2474_s22 = scalar_lea.vmem %s2473_s9, 128 }
  0x18   : > { %2149 = vmatprep.subr.mxu1 %v2530_v1  ;;  %v2712_v22 = vand.u32 4294901760, %v2692_v18  ;;  %v2721_v24 = vld [vmem:[%s219_s17] sm:$0xf]  ;;  %v2734_v27 = vld [vmem:[%s3225_s2 + $0x28] sm:$0xff]  ;;  %v2463_v29 = vld [vmem:[%s3224_s1 + $0x10] sm:$0xff]   ;;  %v2744_v30 = vand.u32 4294901760, %v2719_v23  ;;  %v2794_v43 = vsub.f32 %v2647_v9, %v2661_v12  ;;  %v2810_v48 = vsub.f32 %v2653_v10, %v2672_v14 }
  0x19   : > { %2130 = vmatpush3.bf16.msra.mxu0 %v2459_v4  ;;  %2150 = vmatpush3.msra.mxu1 %v2636_v7  ;;  %v2728_v26 = vunpack.c.l.bf16 %v2721_v24  ;;  %v2753_v32 = vld [vmem:[%s3225_s2 + $0x20] sm:$0xff]  ;;  %v2760_v34 = vand.u32 4294901760, %v2734_v27  ;;  %v2768_v36 = vld [vmem:[%s3225_s2 + $0x18] sm:$0xff]  ;;  %v2464_v38 = vld [vmem:[%s3224_s1 + $0x8] sm:$0xff]   ;;  %v438_v41 = vand.u32 4294901760, %v2737_v28  ;;  %v445_v46 = vand.u32 4294901760, %v2756_v33 }
  0x1a   : > { %2151 = vmatprep.subr.mxu1 %v2530_v1  ;;  %2131 = vmatprep.subr.bf16.mxu0 %v2530_v1  ;;  %v2779_v39 = vand.u32 4294901760, %v2753_v32  ;;  %v2790_v42 = vld [vmem:[%s3225_s2 + $0x10] sm:$0xff]  ;;  %v2798_v44 = vand.u32 4294901760, %v2768_v36  ;;  %v2806_v47 = vld [vmem:[%s3225_s2 + $0x8] sm:$0xff]  ;;  %v2465_v49 = vld [vmem:[%s3224_s1] sm:$0xff]   ;;  %v452_v52 = vand.u32 4294901760, %v2772_v37  ;;  %v2825_v53 = vsub.f32 %v2668_v13, %v2685_v17 }
  0x1b   : > { %2152 = vmatpush3.msra.mxu1 %v2642_v8  ;;  %v327_v31 = vmul.f32 %v2728_v26, %v2728_v26  ;;  %v2817_v50 = vand.u32 4294901760, %v2790_v42  ;;  %v439_v51 = vsub.f32 %v2737_v28, %v438_v41  ;;  %v2832_v54 = vld [vmem:[%s3225_s2] sm:$0xff]  ;;  %v2836_v55 = vand.u32 4294901760, %v2806_v47  ;;  %s215_s17 = scalar_lea.vmem [#allocation2], %s1978_s15 }
  0x1c   : > { %2153 = vmatprep.subr.mxu1 %v2530_v1  ;;  %v446_v57 = vsub.f32 %v2756_v33, %v445_v46  ;;  %v459_v58 = vand.u32 4294901760, %v2794_v43  ;;  %v2847_v59 = vsub.f32 %v2678_v15, %v2696_v19  ;;  %v2852_v60 = vand.u32 4294901760, %v2832_v54  ;;  %s1915_s23 = sshll.u32 %s215_s17, 4  ;;  %s1916_s23 = int_to_ptr.vmem [resolvable:$true] %s1915_s23 }
  0x1d   : > { %2132 = vmatpush3.bf16.msra.mxu0 %v2460_v11  ;;  %2154 = vmatpush3.msra.mxu1 %v2661_v12  ;;  %v2762_v35 = vand.u32 4294901760, %v327_v31  ;;  %v440_v61 = vand.u32 4294901760, %v439_v51  ;;  %v453_v62 = vsub.f32 %v2772_v37, %v452_v52  ;;  %v466_v63 = vand.u32 4294901760, %v2810_v48  ;;  %s2468_s7 = scalar_lea.vmem %s1916_s23, 64  ;;  %p2475_p0 = scmp.lt.s32.totalorder %s1916_s23, %s2473_s9 }
  0x1e   : > { %2155 = vmatprep.subr.mxu1 %v2530_v1  ;;  %2133 = vmatprep.subr.bf16.mxu0 %v2530_v1  ;;  %v2860_v0 = vsub.f32 %v2692_v18, %v2712_v22  ;;  %v447_v4 = vand.u32 4294901760, %v446_v57  ;;  %v460_v5 = vsub.f32 %v2794_v43, %v459_v58  ;;  %v473_v6 = vand.u32 4294901760, %v2825_v53  ;;  %p2469_p11 = scmp.ne.s32.totalorder %s1916_s23, %s2468_s7  ;;  %p2476_p1 = scmp.lt.s32.totalorder %s2474_s22, %s2468_s7 }
  0x1f   : > { %2156 = vmatpush3.msra.mxu1 %v2672_v14  ;;  %v2782_v40 = vsub.f32 %v327_v31, %v2762_v35  ;;  %v2873_v9 = vsub.f32 %v2705_v20, %v2725_v25  ;;  %v454_v10 = vand.u32 4294901760, %v453_v62  ;;  %v467_v11 = vsub.f32 %v2810_v48, %v466_v63 }
  0x20   : > { %2157 = vmatprep.subr.mxu1 %v2530_v1  ;;  %v480_v13 = vand.u32 4294901760, %v2847_v59  ;;  %v2884_v15 = vsub.f32 %v2719_v23, %v2744_v30  ;;  %v474_v18 = vsub.f32 %v2825_v53, %v473_v6  ;;  %v487_v20 = vand.u32 4294901760, %v2860_v0  ;;  %p2470_p12 = pnand %p2469_p11, %p2601_p5  ;;  %p2477_p2 = por %p2476_p1, %p2475_p0 }
  0x21   : > { %2134 = vmatpush3.bf16.msra.mxu0 %v2461_v16  ;;  %2158 = vmatpush3.msra.mxu1 %v2685_v17  ;;  %v427_v45 = vand.u32 4294901760, %v2782_v40  ;;  %v461_v16 = vand.u32 4294901760, %v460_v5  ;;  %v468_v23 = vand.u32 4294901760, %v467_v11  ;;  %v2905_v31 = vsub.f32 %v2753_v32, %v2779_v39 }
  0x22   : > { %2159 = vmatprep.subr.mxu1 %v2530_v1  ;;  %2135 = vmatprep.subr.bf16.mxu0 %v2530_v1  ;;  %v2916_v51 = vsub.f32 %v2768_v36, %v2798_v44  ;;  %v2949_v11 = vsub.f32 %v2832_v54, %v2852_v60  ;;  %p2471_p13 = pneg %p2470_p12 }
  0x23   : > { %2160 = vmatpush3.msra.mxu1 %v2696_v19  ;;  %v428_v56 = vsub.f32 %v2782_v40, %v427_v45 }
  0x24   : > { %2161 = vmatprep.subr.mxu1 %v2530_v1  ;;  %p2478_p3 = pnand %p2477_p2, %p2471_p13 }
  0x25   : > { %2136 = vmatpush3.bf16.msra.mxu0 %v2462_v21  ;;  %2162 = vmatpush3.msra.mxu1 %v2712_v22  ;;  %v429_v2 = vand.u32 4294901760, %v428_v56  ;;  %v2894_v21 = vsub.f32 %v2734_v27, %v2760_v34  ;;  %v475_v27 = vand.u32 4294901760, %v474_v18 }
  0x26   : > { %2163 = vmatprep.subr.mxu1 %v2530_v1  ;;  %2137 = vmatprep.subr.bf16.mxu0 %v2530_v1 }
  0x27   : > { %2164 = vmatpush3.msra.mxu1 %v2725_v25  ;;  %v508_v57 = vand.u32 4294901760, %v2894_v21 }
  0x28   : > { %2165 = vmatprep.subr.mxu1 %v2530_v1 }
  0x29   : > { %2138 = vmatpush3.bf16.msra.mxu0 %v2463_v29  ;;  %2166 = vmatpush3.msra.mxu1 %v2744_v30  ;;  %v494_v29 = vand.u32 4294901760, %v2873_v9  ;;  %v509_v5 = vsub.f32 %v2894_v21, %v508_v57 }
  0x2a   : > { %2167 = vmatprep.subr.mxu1 %v2530_v1  ;;  %2139 = vmatprep.subr.bf16.mxu0 %v2530_v1 }
  0x2b   : > { %2168 = vmatpush3.msra.mxu1 %v2760_v34  ;;  %v495_v56 = vsub.f32 %v2873_v9, %v494_v29 }
  0x2c   : > { %2169 = vmatprep.subr.mxu1 %v2530_v1 }
  0x2d   : > { %2140 = vmatpush3.bf16.msra.mxu0 %v2464_v38  ;;  %2170 = vmatpush3.msra.mxu1 %v2779_v39  ;;  %v488_v38 = vsub.f32 %v2860_v0, %v487_v20 }
  0x2e   : > { %2171 = vmatprep.subr.mxu1 %v2530_v1  ;;  %2141 = vmatprep.subr.bf16.mxu0 %v2530_v1 }
  0x2f   : > { %2172 = vmatpush3.msra.mxu1 %v2798_v44  ;;  %v489_v36 = vand.u32 4294901760, %v488_v38 }
  0x30   : > { %2173 = vmatprep.subr.mxu1 %v2530_v1 }
  0x31   : > { %2142 = vmatpush3.bf16.msra.mxu0 %v2465_v49  ;;  %2174 = vmatpush3.msra.mxu1 %v2817_v50  ;;  %v501_v49 = vand.u32 4294901760, %v2884_v15 }
  0x32   : > { %2175 = vmatprep.subr.mxu1 %v2530_v1  ;;  %2182 = vmatprep.subr.mxu0 %v2530_v1 }
  0x33   : > { %2176 = vmatpush3.msra.mxu1 %v2836_v55  ;;  %v502_v62 = vsub.f32 %v2884_v15, %v501_v49 }
  0x34   : > { %2144 = vmatmul.mubr.bf16.vlgmr.msra.gmra.mxu0 %v2721_v24  ;;  %2177 = vmatprep.subr.mxu1 %v2530_v1  ;;  %v481_v24 = vsub.f32 %v2847_v59, %v480_v13 }
  0x35   : > { %2178 = vmatpush3.msra.mxu1 %v2852_v60  ;;  %2183 = vmatpush3.msra.mxu0 %v440_v61  ;;  %v2927_v61 = vsub.f32 %v2790_v42, %v2817_v50  ;;  %v496_v42 = vand.u32 4294901760, %v495_v56 }
  0x36   : > { %2184 = vmatprep.subr.mxu0 %v2530_v1  ;;  %2217 = vmatprep.subr.mxu1 %v2530_v1  ;;  %v482_v32 = vand.u32 4294901760, %v481_v24 }
  0x37   : > { %2180 = vmatmul.mubr.f32.vlgmr.msra.gmra.mxu1 %v429_v2  ;;  %2185 = vmatpush3.msra.mxu0 %v447_v4  ;;  %v515_v2 = vand.u32 4294901760, %v2905_v31  ;;  %v2938_v4 = vsub.f32 %v2806_v47, %v2836_v55  ;;  %v503_v47 = vand.u32 4294901760, %v502_v62  ;;  %v529_v18 = vand.u32 4294901760, %v2927_v61 }
  0x38   : > { %2218 = vmatpush3.msra.mxu1 %v2737_v28  ;;  %2186 = vmatprep.subr.mxu0 %v2530_v1  ;;  %v989_v28 = vld [vmem:[%s3226_s3] sm:$0xf] }
  0x39   : > { %2219 = vmatprep.subr.mxu1 %v2530_v1  ;;  %2187 = vmatpush3.msra.mxu0 %v454_v10  ;;  %v522_v10 = vand.u32 4294901760, %v2916_v51  ;;  %v536_v24 = vand.u32 4294901760, %v2938_v4  ;;  %v530_v38 = vsub.f32 %v2927_v61, %v529_v18 }
  0x3a   : > { %2220 = vmatpush3.msra.mxu1 %v2756_v33  ;;  %2188 = vmatprep.subr.mxu0 %v2530_v1 }
  0x3b   : > { %2221 = vmatprep.subr.mxu1 %v2530_v1  ;;  %2189 = vmatpush3.msra.mxu0 %v461_v16  ;;  %v516_v16 = vsub.f32 %v2905_v31, %v515_v2  ;;  %v523_v54 = vsub.f32 %v2916_v51, %v522_v10  ;;  %v531_v62 = vand.u32 4294901760, %v530_v38 }
  0x3c   : > { %2222 = vmatpush3.msra.mxu1 %v2772_v37  ;;  %2190 = vmatprep.subr.mxu0 %v2530_v1 }
  0x3d   : > { %2223 = vmatprep.subr.mxu1 %v2530_v1  ;;  %2191 = vmatpush3.msra.mxu0 %v468_v23  ;;  %v510_v23 = vand.u32 4294901760, %v509_v5  ;;  %v524_v56 = vand.u32 4294901760, %v523_v54 }
  0x3e   : > { %2224 = vmatpush3.msra.mxu1 %v2794_v43  ;;  %2192 = vmatprep.subr.mxu0 %v2530_v1 }
  0x3f   : > { %2225 = vmatprep.subr.mxu1 %v2530_v1  ;;  %2193 = vmatpush3.msra.mxu0 %v475_v27  ;;  %v517_v27 = vand.u32 4294901760, %v516_v16 }
  0x40   : > { %2226 = vmatpush3.msra.mxu1 %v2810_v48  ;;  %2194 = vmatprep.subr.mxu0 %v2530_v1 }
  0x41   : > { %2227 = vmatprep.subr.mxu1 %v2530_v1  ;;  %2195 = vmatpush3.msra.mxu0 %v482_v32  ;;  %v543_v32 = vand.u32 4294901760, %v2949_v11 }
  0x42   : > { %2228 = vmatpush3.msra.mxu1 %v2825_v53  ;;  %2196 = vmatprep.subr.mxu0 %v2530_v1 }
  0x43   : > { %2229 = vmatprep.subr.mxu1 %v2530_v1  ;;  %2197 = vmatpush3.msra.mxu0 %v489_v36  ;;  %v537_v36 = vsub.f32 %v2938_v4, %v536_v24 }
  0x44   : > { %2230 = vmatpush3.msra.mxu1 %v2847_v59  ;;  %2198 = vmatprep.subr.mxu0 %v2530_v1 }
  0x45   : > { %2231 = vmatprep.subr.mxu1 %v2530_v1  ;;  %2199 = vmatpush3.msra.mxu0 %v496_v42  ;;  %v544_v42 = vsub.f32 %v2949_v11, %v543_v32  ;;  %v538_v5 = vand.u32 4294901760, %v537_v36 }
  0x46   : > { %2232 = vmatpush3.msra.mxu1 %v2860_v0  ;;  %2200 = vmatprep.subr.mxu0 %v2530_v1 }
  0x47   : > { %2233 = vmatprep.subr.mxu1 %v2530_v1  ;;  %2201 = vmatpush3.msra.mxu0 %v503_v47  ;;  %v545_v47 = vand.u32 4294901760, %v544_v42 }
  0x48   : > { %2234 = vmatpush3.msra.mxu1 %v2873_v9  ;;  %2202 = vmatprep.subr.mxu0 %v2530_v1 }
  0x49   : > { %2235 = vmatprep.subr.mxu1 %v2530_v1  ;;  %2203 = vmatpush3.msra.mxu0 %v510_v23 }
  0x4a   : > { %2236 = vmatpush3.msra.mxu1 %v2884_v15  ;;  %2204 = vmatprep.subr.mxu0 %v2530_v1 }
  0x4b   : > { %2237 = vmatprep.subr.mxu1 %v2530_v1  ;;  %2205 = vmatpush3.msra.mxu0 %v517_v27 }
  0x4c   : > { %2238 = vmatpush3.msra.mxu1 %v2894_v21  ;;  %2206 = vmatprep.subr.mxu0 %v2530_v1 }
  0x4d   : > { %2239 = vmatprep.subr.mxu1 %v2530_v1  ;;  %2207 = vmatpush3.msra.mxu0 %v524_v56 }
  0x4e   : > { %2240 = vmatpush3.msra.mxu1 %v2905_v31  ;;  %2208 = vmatprep.subr.mxu0 %v2530_v1 }
  0x4f   : > { %2241 = vmatprep.subr.mxu1 %v2530_v1  ;;  %2209 = vmatpush3.msra.mxu0 %v531_v62 }
  0x50   : > { %2242 = vmatpush3.msra.mxu1 %v2916_v51  ;;  %2210 = vmatprep.subr.mxu0 %v2530_v1 }
  0x51   : > { %2243 = vmatprep.subr.mxu1 %v2530_v1  ;;  %2211 = vmatpush3.msra.mxu0 %v538_v5 }
  0x52   : > { %2244 = vmatpush3.msra.mxu1 %v2927_v61  ;;  %2212 = vmatprep.subr.mxu0 %v2530_v1 }
  0x53   : > { %2245 = vmatprep.subr.mxu1 %v2530_v1  ;;  %2213 = vmatpush3.msra.mxu0 %v545_v47 }
  0x54   : > { %2214 = vmatprep.mubr.msk.f32.mxu0 %vm2531_vm0, %v2530_v1  ;;  %2246 = vmatpush3.msra.mxu1 %v2938_v4 }
  0x55   : > { %2215 = vmatmul.mubr.f32.vlgmr.msra.gmra.mxu0 %v2762_v35  ;;  %2247 = vmatprep.subr.mxu1 %v2530_v1 }
  0x56   : > { %2252 = vmatprep.subr.mxu0 %v2530_v1  ;;  %2248 = vmatpush3.msra.mxu1 %v2949_v11 }
  0x57   : > { %2249 = vmatprep.mubr.msk.f32.mxu1 %vm2531_vm0, %v2530_v1  ;;  %2253 = vmatpush3.msra.mxu0 %v2619_v3 }
  0x58   : > { %2250 = vmatmul.mubr.f32.vlgmr.msra.gmra.mxu1 %v2782_v40  ;;  %2254 = vmatprep.subr.mxu0 %v2530_v1 }
  0x59   : > { %2287 = vmatprep.subr.mxu1 %v2530_v1  ;;  %2255 = vmatpush3.msra.mxu0 %v2636_v7 }
  0x5a   : > { %2288 = vmatpush3.msra.mxu1 %v438_v41  ;;  %2256 = vmatprep.subr.mxu0 %v2530_v1 }
  0x5b   : > { %2289 = vmatprep.subr.mxu1 %v2530_v1  ;;  %2257 = vmatpush3.msra.mxu0 %v2642_v8 }
  0x5c   : > { %2290 = vmatpush3.msra.mxu1 %v445_v46  ;;  %2258 = vmatprep.subr.mxu0 %v2530_v1 }
  0x5d   : > { %2291 = vmatprep.subr.mxu1 %v2530_v1  ;;  %2259 = vmatpush3.msra.mxu0 %v2661_v12 }
  0x5e   : > { %2292 = vmatpush3.msra.mxu1 %v452_v52  ;;  %2260 = vmatprep.subr.mxu0 %v2530_v1 }
  0x5f   : > { %2293 = vmatprep.subr.mxu1 %v2530_v1  ;;  %2261 = vmatpush3.msra.mxu0 %v2672_v14 }
  0x60   : > { %2294 = vmatpush3.msra.mxu1 %v459_v58  ;;  %2262 = vmatprep.subr.mxu0 %v2530_v1 }
  0x61   : > { %2295 = vmatprep.subr.mxu1 %v2530_v1  ;;  %2263 = vmatpush3.msra.mxu0 %v2685_v17 }
  0x62   : > { %2296 = vmatpush3.msra.mxu1 %v466_v63  ;;  %2264 = vmatprep.subr.mxu0 %v2530_v1 }
  0x63   : > { %2297 = vmatprep.subr.mxu1 %v2530_v1  ;;  %2265 = vmatpush3.msra.mxu0 %v2696_v19 }
  0x64   : > { %2298 = vmatpush3.msra.mxu1 %v473_v6  ;;  %2266 = vmatprep.subr.mxu0 %v2530_v1 }
  0x65   : > { %2299 = vmatprep.subr.mxu1 %v2530_v1  ;;  %2267 = vmatpush3.msra.mxu0 %v2712_v22 }
  0x66   : > { %2300 = vmatpush3.msra.mxu1 %v480_v13  ;;  %2268 = vmatprep.subr.mxu0 %v2530_v1 }
  0x67   : > { %2301 = vmatprep.subr.mxu1 %v2530_v1  ;;  %2269 = vmatpush3.msra.mxu0 %v2725_v25 }
  0x68   : > { %2302 = vmatpush3.msra.mxu1 %v487_v20  ;;  %2270 = vmatprep.subr.mxu0 %v2530_v1 }
  0x69   : > { %2303 = vmatprep.subr.mxu1 %v2530_v1  ;;  %2271 = vmatpush3.msra.mxu0 %v2744_v30 }
  0x6a   : > { %2304 = vmatpush3.msra.mxu1 %v494_v29  ;;  %2272 = vmatprep.subr.mxu0 %v2530_v1 }
  0x6b   : > { %2305 = vmatprep.subr.mxu1 %v2530_v1  ;;  %2273 = vmatpush3.msra.mxu0 %v2760_v34 }
  0x6c   : > { %2306 = vmatpush3.msra.mxu1 %v501_v49  ;;  %2274 = vmatprep.subr.mxu0 %v2530_v1 }
  0x6d   : > { %2307 = vmatprep.subr.mxu1 %v2530_v1  ;;  %2275 = vmatpush3.msra.mxu0 %v2779_v39 }
  0x6e   : > { %2308 = vmatpush3.msra.mxu1 %v508_v57  ;;  %2276 = vmatprep.subr.mxu0 %v2530_v1 }
  0x6f   : > { %2309 = vmatprep.subr.mxu1 %v2530_v1  ;;  %2277 = vmatpush3.msra.mxu0 %v2798_v44 }
  0x70   : > { %2310 = vmatpush3.msra.mxu1 %v515_v2  ;;  %2278 = vmatprep.subr.mxu0 %v2530_v1 }
  0x71   : > { %2311 = vmatprep.subr.mxu1 %v2530_v1  ;;  %2279 = vmatpush3.msra.mxu0 %v2817_v50 }
  0x72   : > { %2312 = vmatpush3.msra.mxu1 %v522_v10  ;;  %2280 = vmatprep.subr.mxu0 %v2530_v1 }
  0x73   : > { %2313 = vmatprep.subr.mxu1 %v2530_v1  ;;  %2281 = vmatpush3.msra.mxu0 %v2836_v55 }
  0x74   : > { %2314 = vmatpush3.msra.mxu1 %v529_v18  ;;  %2282 = vmatprep.subr.mxu0 %v2530_v1 }
  0x75   : > { %2315 = vmatprep.subr.mxu1 %v2530_v1  ;;  %2283 = vmatpush3.msra.mxu0 %v2852_v60 }
  0x76   : > { %2284 = vmatprep.mubr.msk.f32.mxu0 %vm2531_vm0, %v2530_v1  ;;  %2316 = vmatpush3.msra.mxu1 %v536_v24 }
  0x77   : > { %2285 = vmatmul.mubr.f32.vlgmr.msra.gmra.mxu0 %v427_v45  ;;  %2317 = vmatprep.subr.mxu1 %v2530_v1 }
  0x78   : > { %2322 = vmatprep.subr.mxu0 %v2530_v1  ;;  %2318 = vmatpush3.msra.mxu1 %v543_v32 }
  0x79   : > { %2319 = vmatprep.mubr.msk.f32.mxu1 %vm2531_vm0, %v2530_v1  ;;  %2323 = vmatpush3.msra.mxu0 %v2619_v3  ;;  %v996_v3 = vsel %vm994_vm1, %v989_v28, 0 }
  0x7a   : > { %2320 = vmatmul.mubr.f32.vlgmr.msra.gmra.mxu1 %v2762_v35  ;;  %2324 = vmatprep.subr.mxu0 %v2530_v1  ;;  %v3103_v33 = vand.u32 4294901760, %v996_v3 }
  0x7b   : > { %2325 = vmatpush3.msra.mxu0 %v2636_v7  ;;  %2354 = vmatprep.mubr.msk.f32.mxu0 %vm2531_vm0, %v2530_v1  ;;  %v1444_v7 = vld [vmem:[%s3227_s4] sm:$0xf] }
  0x7c   : > { %2326 = vmatprep.subr.mxu0 %v2530_v1  ;;  %2357 = vmatprep.subr.mxu1 %v2530_v1 }
  0x7d   : > { %2327 = vmatpush3.msra.mxu0 %v2642_v8  ;;  %2359 = vmatprep.mubr.msk.f32.mxu1 %vm2531_vm0, %v2530_v1  ;;  %v1449_v8 = vsel %vm994_vm1, %v1444_v7, 0 }
  0x7e   : > { %2328 = vmatprep.subr.mxu0 %v2530_v1  ;;  %2358 = vmatpush3.msra.mxu1 %v3103_v33 }
  0x7f   : > { %2329 = vmatpush3.msra.mxu0 %v2661_v12  ;;  %2362 = vmatprep.subr.mxu1 %v2530_v1  ;;  %v3143_v12 = vand.u32 4294901760, %v1449_v8 }
  0x80   : > { %2330 = vmatprep.subr.mxu0 %v2530_v1 }
  0x81   : > { %2331 = vmatpush3.msra.mxu0 %v2672_v14  ;;  %v3146_v14 = vsub.f32 %v1449_v8, %v3143_v12 }
  0x82   : > { %2332 = vmatprep.subr.mxu0 %v2530_v1 }
  0x83   : > { %2333 = vmatpush3.msra.mxu0 %v2685_v17  ;;  %v1106_v17 = vsub.f32 %v996_v3, %v3103_v33  ;;  %v1560_v2 = vand.u32 4294901760, %v3146_v14 }
  0x84   : > { %2334 = vmatprep.subr.mxu0 %v2530_v1 }
  0x85   : > { %2335 = vmatpush3.msra.mxu0 %v2696_v19  ;;  %v1561_v10 = vsub.f32 %v3146_v14, %v1560_v2 }
  0x86   : > { %2336 = vmatprep.subr.mxu0 %v2530_v1 }
  0x87   : > { %2337 = vmatpush3.msra.mxu0 %v2712_v22  ;;  %v1562_v18 = vand.u32 4294901760, %v1561_v10 }
  0x88   : > { %2338 = vmatprep.subr.mxu0 %v2530_v1 }
  0x89   : > { %2339 = vmatpush3.msra.mxu0 %v2725_v25  ;;  %v1107_v25 = vand.u32 4294901760, %v1106_v17 }
  0x8a   : > { %2340 = vmatprep.subr.mxu0 %v2530_v1 }
  0x8b   : > { %2341 = vmatpush3.msra.mxu0 %v2744_v30  ;;  %v1108_v40 = vsub.f32 %v1106_v17, %v1107_v25 }
  0x8c   : > { %2342 = vmatprep.subr.mxu0 %v2530_v1 }
  0x8d   : > { %2343 = vmatpush3.msra.mxu0 %v2760_v34  ;;  %v1109_v46 = vand.u32 4294901760, %v1108_v40 }
  0x8e   : > { %2344 = vmatprep.subr.mxu0 %v2530_v1 }
  0x8f   : > { %2345 = vmatpush3.msra.mxu0 %v2779_v39 }
  0x90   : > { %2346 = vmatprep.subr.mxu0 %v2530_v1 }
  0x91   : > { %2347 = vmatpush3.msra.mxu0 %v2798_v44 }
  0x92   : > { %2348 = vmatprep.subr.mxu0 %v2530_v1 }
  0x93   : > { %2349 = vmatpush3.msra.mxu0 %v2817_v50 }
  0x94   : > { %2350 = vmatprep.subr.mxu0 %v2530_v1 }
  0x95   : > { %2351 = vmatpush3.msra.mxu0 %v2836_v55 }
  0x96   : > { %2352 = vmatprep.subr.mxu0 %v2530_v1 }
  0x97   : > { %2353 = vmatpush3.msra.mxu0 %v2852_v60 }
  0x98   : > { %2355 = vmatmul.mubr.f32.vlgmr.msra.gmra.mxu0 %v2762_v35  ;;  %2397 = vmatprep.subr.mxu0 %v2530_v1 }
  0x99   : > { %2399 = vmatprep.mubr.msk.f32.mxu0 %vm2531_vm0, %v2530_v1  ;;  %2398 = vmatpush3.msra.mxu0 %v3146_v14 }
  0x9a   : > { %2407 = vmatprep.subr.mxu0 %v2530_v1 }
  0xf4   : > { %v321_v19 = vpop.f32.mrf.mxu0 }
  0xf5   : > { %v992_v22 = vsel %vm990_vm2, %v321_v19, 0  ;;  %v985_v20 = vmul.f32 %v321_v19, %v321_v19 }
  0xf6   : > { %v1064_v30 = vand.u32 4294901760, %v992_v22  ;;  %v2145_v34 = vpop.f32.mrf.mxu0 }
  0xf7   : > { %v431_v35 = vpop.f32.mrf.mxu1 }
  0xf8   : > { %v1065_v37 = vsub.f32 %v992_v22, %v1064_v30  ;;  %v324_v39 = vpop.f32.mrf.mxu0 }
  0xf9   : > { %v2181_v41 = vpop.f32.mrf.mxu1 }
  0xfa   : > { %v1066_v43 = vand.u32 4294901760, %v1065_v37  ;;  %v2146_v44 = vpop.f32.mrf.mxu0 }
  0xfc   : > { %v1067_v45 = vsub.f32 %v1065_v37, %v1066_v43 }
  0xfe   : > { %v1068_v48 = vand.u32 4294901760, %v1067_v45 }
 0x100   : > { %2360 = vmatmul.mubr.f32.vlgmr.msra.gmra.mxu1 %v1068_v48 }
 0x101   : > { %2363 = vmatpush3.msra.mxu1 %v1109_v46  ;;  %2364 = vmatprep.mubr.msk.f32.mxu1 %vm2531_vm0, %v2530_v1 }
 0x102   : > { %2367 = vmatprep.subr.mxu1 %v2530_v1 }
 0x104   : > { %2365 = vmatmul.mubr.f32.vlgmr.msra.gmra.mxu1 %v1064_v30 }
 0x105   : > { %2368 = vmatpush3.msra.mxu1 %v1106_v17  ;;  %2369 = vmatprep.mubr.msk.f32.mxu1 %vm2531_vm0, %v2530_v1 }
 0x106   : > { %2372 = vmatprep.subr.mxu1 %v2530_v1 }
 0x108   : > { %2370 = vmatmul.mubr.f32.vlgmr.msra.gmra.mxu1 %v1065_v37 }
 0x109   : > { %2373 = vmatpush3.msra.mxu1 %v3103_v33  ;;  %2374 = vmatprep.mubr.msk.f32.mxu1 %vm2531_vm0, %v2530_v1 }
 0x10a   : > { %2377 = vmatprep.subr.mxu1 %v2530_v1 }
 0x10c   : > { %2375 = vmatmul.mubr.f32.vlgmr.msra.gmra.mxu1 %v1066_v43 }
 0x10d   : > { %2378 = vmatpush3.msra.mxu1 %v1107_v25  ;;  %2379 = vmatprep.mubr.msk.f32.mxu1 %vm2531_vm0, %v2530_v1 }
 0x10e   : > { %2382 = vmatprep.subr.mxu1 %v2530_v1 }
 0x110   : > { %2380 = vmatmul.mubr.f32.vlgmr.msra.gmra.mxu1 %v1064_v30 }
 0x111   : > { %2383 = vmatpush3.msra.mxu1 %v3103_v33  ;;  %2384 = vmatprep.mubr.msk.f32.mxu1 %vm2531_vm0, %v2530_v1 }
 0x112   : > { %2387 = vmatprep.subr.mxu1 %v2530_v1 }
 0x114   : > { %2385 = vmatmul.mubr.f32.vlgmr.msra.gmra.mxu1 %v1064_v30 }
 0x115   : > { %v582_v50 = vpop.f32.mrf.mxu0  ;;  %2388 = vmatpush3.msra.mxu1 %v3143_v12  ;;  %2389 = vmatprep.mubr.msk.f32.mxu1 %vm2531_vm0, %v2530_v1 }
 0x116   : > { %2392 = vmatprep.subr.mxu1 %v2530_v1  ;;  %v583_v0 = vadd.f32 %v582_v50, %v431_v35 }
 0x117   : > { %v2216_v52 = vpop.f32.mrf.mxu0 }
 0x118   : > { %v686_v53 = vpop.f32.mrf.mxu1 }
 0x119   : > { %v687_v6 = vadd.f32 %v686_v53, %v583_v0 }
 0x11a   : > { %v2251_v55 = vpop.f32.mrf.mxu1 }
 0x137   : > { %v775_v58 = vpop.f32.mrf.mxu0 }
 0x138   : > { %v776_v9 = vadd.f32 %v775_v58, %v687_v6 }
 0x139   : > { %v2286_v59 = vpop.f32.mrf.mxu0 }
 0x13a   : > { %v894_v60 = vpop.f32.mrf.mxu1 }
 0x13b   : > { %v895_v13 = vadd.f32 %v894_v60, %v776_v9 }
 0x13c   : > { %v2321_v63 = vpop.f32.mrf.mxu1 }
 0x158   : > { %v981_v15 = vpop.f32.mrf.mxu0 }
 0x159   : > { %v982_v21 = vadd.f32 %v981_v15, %v895_v13 }
 0x15a   : > { %v2356_v29 = vpop.f32.mrf.mxu0 }
 0x15b   : > { %v986_v31 = vsub.f32 %v982_v21, %v985_v20 }
 0x15d   : > { %v987_v49 = vadd.f32 1e-05, %v986_v31 }
 0x15f   : > { %2466 = vrsqrt.f32 %v987_v49 }
 0x16c   : > { %v2467_v51 = vpop.eup %2466 }
 0x16d   : > { %v1446_v57 = vsel %vm990_vm2, %v2467_v51, 0 }
 0x16e   : > { %v1517_v61 = vand.u32 4294901760, %v1446_v57 }
 0x170   : > { %v1518_v4 = vsub.f32 %v1446_v57, %v1517_v61 }
 0x172   : > { %2400 = vmatmul.mubr.f32.vlgmr.msra.gmra.mxu0 %v1518_v4  ;;  %v1519_v11 = vand.u32 4294901760, %v1518_v4 }
 0x173   : > { %2408 = vmatpush3.msra.mxu0 %v1560_v2  ;;  %2409 = vmatprep.mubr.msk.f32.mxu0 %vm2531_vm0, %v2530_v1 }
 0x174   : > { %v1520_v16 = vsub.f32 %v1518_v4, %v1519_v11 }
 0x176   : > { %2410 = vmatmul.mubr.f32.vlgmr.msra.gmra.mxu0 %v1517_v61  ;;  %v1521_v23 = vand.u32 4294901760, %v1520_v16 }
 0x178   : > { %2390 = vmatmul.mubr.f32.vlgmr.msra.gmra.mxu1 %v1521_v23 }
 0x179   : > { %2393 = vmatpush3.msra.mxu1 %v1562_v18  ;;  %2394 = vmatprep.mubr.msk.f32.mxu1 %vm2531_vm0, %v2530_v1 }
 0x17a   : > { %2402 = vmatprep.subr.mxu1 %v2530_v1 }
 0x17c   : > { %2395 = vmatmul.mubr.f32.vlgmr.msra.gmra.mxu1 %v1517_v61 }
 0x17d   : > { %2403 = vmatpush3.msra.mxu1 %v3143_v12  ;;  %2404 = vmatprep.mubr.msk.f32.mxu1 %vm2531_vm0, %v2530_v1 }
 0x17e   : > { %2412 = vmatprep.subr.mxu1 %v2530_v1 }
 0x180   : > { %2405 = vmatmul.mubr.f32.vlgmr.msra.gmra.mxu1 %v1519_v11 }
 0x181   : > { %2413 = vmatpush3.msra.mxu1 %v3143_v12  ;;  %2414 = vmatprep.mubr.msk.f32.mxu1 %vm2531_vm0, %v2530_v1 }
 0x184   : > { %2415 = vmatmul.mubr.f32.vlgmr.msra.gmra.mxu1 %v1517_v61 }
 0x1c0   : > { %v1070_v54 = vpop.f32.mrf.mxu1 }
 0x1c2   : > { %v2361_v24 = vpop.f32.mrf.mxu1 }
 0x1c4   : > { %v1146_v27 = vpop.f32.mrf.mxu1 }
 0x1c5   : > { %v1147_v38 = vadd.f32 %v1146_v27, %v1070_v54 }
 0x1c6   : > { %v2366_v32 = vpop.f32.mrf.mxu1 }
 0x1c8   : > { %v1220_v56 = vpop.f32.mrf.mxu1 }
 0x1c9   : > { %v1221_v36 = vadd.f32 %v1220_v56, %v1147_v38 }
 0x1ca   : > { %v2371_v62 = vpop.f32.mrf.mxu1 }
 0x1cc   : > { %v1294_v42 = vpop.f32.mrf.mxu1 }
 0x1cd   : > { %v1295_v5 = vadd.f32 %v1294_v42, %v1221_v36 }
 0x1ce   : > { %v2376_v47 = vpop.f32.mrf.mxu1 }
 0x1d0   : > { %v1368_v28 = vpop.f32.mrf.mxu1 }
 0x1d1   : > { %v1369_v3 = vadd.f32 %v1368_v28, %v1295_v5 }
 0x1d2   : > { %v2381_v33 = vpop.f32.mrf.mxu1 }
 0x1d4   : > { %v1440_v7 = vpop.f32.mrf.mxu1 }
 0x1d5   : > { %v1441_v8 = vadd.f32 %v1440_v7, %v1369_v3 }
 0x1d6   : > { %v2386_v12 = vpop.f32.mrf.mxu1 }
 0x1d7   : > { %v1897_v45 = vsub.f32 %v2728_v26, %v1441_v8 }
 0x232   : > { %v1673_v1 = vpop.f32.mrf.mxu0 }
 0x234   : > { %v2401_v14 = vpop.f32.mrf.mxu0 }
 0x236   : > { %v1821_v17 = vpop.f32.mrf.mxu0 }
 0x238   : > { %v1523_v19 = vpop.f32.mrf.mxu1  ;;  %v2411_v22 = vpop.f32.mrf.mxu0 }
 0x23a   : > { %v2391_v25 = vpop.f32.mrf.mxu1 }
 0x23c   : > { %v1599_v30 = vpop.f32.mrf.mxu1 }
 0x23d   : > { %v1600_v34 = vadd.f32 %v1599_v30, %v1523_v19 }
 0x23e   : > { %v2396_v35 = vpop.f32.mrf.mxu1 }
 0x23f   : > { %v1674_v37 = vadd.f32 %v1673_v1, %v1600_v34 }
 0x240   : > { %v1747_v39 = vpop.f32.mrf.mxu1 }
 0x241   : > { %v1748_v40 = vadd.f32 %v1747_v39, %v1674_v37 }
 0x242   : > { %v2406_v41 = vpop.f32.mrf.mxu1 }
 0x243   : > { %v1822_v43 = vadd.f32 %v1821_v17, %v1748_v40 }
 0x244   : > { %v1893_v44 = vpop.f32.mrf.mxu1 }
 0x245   : > { %v1894_v46 = vadd.f32 %v1893_v44, %v1822_v43 }
 0x246   : > { %v2416_v48 = vpop.f32.mrf.mxu1 }
 0x247   : > { %v1898_v50 = vmul.f32 %v1897_v45, %v1894_v46 }
 0x249   : > { %v1899_v52 = vpack.c.bf16 %v1898_v50, %v1898_v50 }
 0x24b   : > { %1900 = vst [vmem:[%s215_s17] sm:$0xf] %v1899_v52 }
 0x24c   : > { %2481 = shalt.err (!%p2478_p3)
}
 0x24d   : > { %s2482_s10 = scalar_lea.hbm %s1913_s30, 64  ;;  %s2486_s13 = scalar_lea.hbm %s3228_s5, 128 }
 0x24e   : > { %p2483_p4 = scmp.ne.s32.totalorder %s1913_s30, %s2482_s10  ;;  %p2487_p9 = scmp.lt.s32.totalorder %s1913_s30, %s3228_s5 }
 0x24f   : > { %p2488_p10 = scmp.lt.s32.totalorder %s2486_s13, %s2482_s10 }
 0x250   : > { %p2484_p7 = pnand %p2483_p4, %p2601_p5 }
 0x251   : > { %p2489_p11 = por %p2488_p10, %p2487_p9 }
 0x252   : > { %p2485_p8 = pneg %p2484_p7 }
 0x254   : > { %p2490_p12 = pnand %p2489_p11, %p2485_p8 }
 0x256   : > { %2493 = shalt.err (!%p2490_p12)
}
 0x257   : > { %2417 = dma.vmem_to_hbm [thread:$0]  (%p2601_p5), %s1916_s23, 64, %s1913_s30, %s1902_s6  }
 0x258 PF: > { %p2423_p13 = scmp.ge.s32.totalorder %s2528_s21, 2  ;;  %s1927_s16 = sand.u32 1, %s2516_s18  }
 0x259   : > { %s1928_s17 = scalar_lea.sflag [#allocation3], %s1927_s16 }
 0x25a   : > { %p2420_p0 = pnand %p2423_p13, %p2605_p6 }
 0x25c   : > { %p2421_p1 = pneg %p2420_p0 }
 0x25e   : > { %2511 = dma.done.wait (%p2421_p1), %s1928_s17, 64  }
 0x25f   : > { %2513 = vsyncadd (%p2421_p1), %s1928_s17, 4294967232  ;;  %p15_p2 = scmp.ge.s32.totalorder %s2588_s24, 4   ;;  %s3231_s18 = smov %s2520_s19 }
 0x260   : > { %s3232_s19 = smov %s2524_s20  ;;  %s3233_s20 = smov %s2599_s27 }
 0x261   : > { %s3234_s21 = smov %s2588_s24  ;;  %17 = sbr.rel (!%p15_p2) target bundleno = 3 (0x3), region = 75 }
 0x266   :  { %1933 = vsyncpa [#allocation3], 1 }
 0x267   :  { %1935 = vsyncpa [#allocation3 + $0x1], 1 }

</bundles_post_ra>
